<compile_context>
chip_gen: v5e
topology: v5e:2x2
jax: 0.10.0
libtpu: 0.0.40
codegen_flags: <defaults>
</compile_context>

<pallas_src>
import numpy as np
import jax
import jax.numpy as jnp
from jax import lax
from jax.experimental import pallas as pl
from jax.experimental.pallas import tpu as pltpu

EPS = 1e-5


# ----------------------------- fused Pallas kernel ------------------------------

def _build_down_kernel(Hp, Wp, Cin, Cout):
    """Build the fused (conv/BN/ReLU -> conv/BN/ReLU) kernel for one pooled image."""
    Wp2 = Wp + 2
    L = (Hp + 2) * Wp2          # flat length of the 1-pixel-padded pooled image
    s = Wp2 + 1                 # max |tap shift| of a 3x3 conv in flat coordinates
    L1 = L + 2 * s              # flat length of the stage-1 (conv1) activation
    L0 = L + 4 * s              # flat length of the kernel input (pooled act + zero margins)

    offsets = [(dy - 1) * Wp2 + (dx - 1) for dy in range(3) for dx in range(3)]

    def conv3x3(x, w, bias, out_len):
        # x: (C, out_len + 2*s) bf16.  The 9 conv taps are static lane-window slices;
        # concatenating them on the sublane axis turns the conv into ONE
        # (Cout, 9*C) x (9*C, out_len) bf16 matmul with f32 accumulation.
        wins = [x[:, s + d: s + d + out_len] for d in offsets]
        b = jnp.concatenate(wins, axis=0)                              # (9*C, out_len) bf16
        y = jnp.dot(w, b, preferred_element_type=jnp.float32)          # (Cout, out_len) f32
        return jnp.maximum(y + bias, 0.0)                              # BN folded into w/bias

    def kernel(p_ref, w1_ref, b1_ref, w2_ref, b2_ref, mask1_ref, o_ref):
        # p_ref:   (1, Cin, L0)      zero-padded, row-flattened pooled image + zero margins
        # w*_ref:  (Cout, 9*C) bf16  packed conv weights with BN scale folded in
        # b*_ref:  (Cout, 1)   f32   fused conv-bias + BN bias
        # mask1:   (1, L1)           1.0 at valid conv1 output positions, else 0.0
        # o_ref:   (1, Cout, Hp, Wp) NCHW output (interior pixels only)
        p0 = p_ref[0].astype(jnp.bfloat16)                              # (Cin, L0)

        y1 = conv3x3(p0, w1_ref[...], b1_ref[...], L1)                  # (Cout, L1) f32
        # Zero everything except valid conv1 outputs: this *is* conv2's zero padding.
        y1 = (y1 * mask1_ref[...]).astype(jnp.bfloat16)
        y2 = conv3x3(y1, w2_ref[...], b2_ref[...], L)                   # (Cout, L)  f32

        # Store the interior (rows 1..Hp, cols 1..Wp of the padded grid) directly as NCHW,
        # so no post-kernel crop / HBM pass is needed.
        for i in range(Hp):
            c0 = (i + 1) * Wp2 + 1
            o_ref[0, :, i, :] = y2[:, c0:c0 + Wp].astype(o_ref.dtype)

    return kernel, L, L0, L1, s


# ------------------------------- wrapper -----------------------------------------

def _fuse_bn_into_weights(w_oihw, conv_bias, gamma, beta, mean, var):
    # (Cout, Cin, 3, 3) -> (Cout, 9*Cin) packed tap-major (column = (dy*3+dx)*Cin + ci),
    # with the BN scale folded into the weights; bias = (conv_bias - mean)*scale + beta.
    co, ci = w_oihw.shape[0], w_oihw.shape[1]
    scale = gamma / jnp.sqrt(var + EPS)                                  # (Cout,)
    w = jnp.transpose(w_oihw, (0, 2, 3, 1)).reshape(co, 9 * ci)
    w = (w * scale[:, None]).astype(jnp.bfloat16)
    bias = ((conv_bias - mean) * scale + beta).reshape(-1, 1)            # (Cout, 1) f32
    return w, bias


@jax.jit
def down_forward(x_nchw, params):
    N, Cin, H, W = x_nchw.shape
    Hp, Wp = H // 2, W // 2
    Cout = params["w1"].shape[0]
    Wp2 = Wp + 2

    kernel, L, L0, L1, s = _build_down_kernel(Hp, Wp, Cin, Cout)

    # 2x2 max-pool via reduce_window: only the quarter-sized pooled activation is written
    # to / read from HBM (instead of the old input-sized 4-tap gather round trip).
    x = x_nchw[:, :, :2 * Hp, :2 * Wp]                     # MaxPool2d(2) floors odd sizes
    pooled = lax.reduce_window(x, -jnp.inf, lax.max, (1, 1, 2, 2), (1, 1, 2, 2), "VALID")
    # 1-pixel zero pad, flatten rows, add 2*s zero margins so all 9 tap windows are in-bounds.
    p = jnp.pad(pooled, ((0, 0), (0, 0), (1, 1), (1, 1))).reshape(N, Cin, L)
    p = jnp.pad(p, ((0, 0), (0, 0), (2 * s, 2 * s)))                     # (N, Cin, L0)

    # Interior mask for the conv1 output layout (flat position s+q <-> padded-grid cell q).
    inner = np.zeros((Hp + 2, Wp2), np.float32)
    inner[1:-1, 1:-1] = 1.0
    mask1_np = np.zeros((1, L1), np.float32)
    mask1_np[0, s:s + L] = inner.reshape(-1)
    mask1 = jnp.asarray(mask1_np)

    w1, b1 = _fuse_bn_into_weights(params["w1"], params["b1"], params["g1"],
                                   params["be1"], params["m1"], params["v1"])
    w2, b2 = _fuse_bn_into_weights(params["w2"], params["b2"], params["g2"],
                                   params["be2"], params["m2"], params["v2"])

    const2 = lambda n: (0, 0)
    out = pl.pallas_call(
        kernel,
        out_shape=jax.ShapeDtypeStruct((N, Cout, Hp, Wp), x_nchw.dtype),
        grid=(N,),
        in_specs=[
            pl.BlockSpec((1, Cin, L0), lambda n: (n, 0, 0)),
            pl.BlockSpec((Cout, 9 * Cin), const2),
            pl.BlockSpec((Cout, 1), const2),
            pl.BlockSpec((Cout, 9 * Cout), const2),
            pl.BlockSpec((Cout, 1), const2),
            pl.BlockSpec((1, L1), const2),
        ],
        out_specs=pl.BlockSpec((1, Cout, Hp, Wp), lambda n: (n, 0, 0, 0)),
        compiler_params=pltpu.CompilerParams(
            dimension_semantics=("parallel",),
            # Tiny footprint at these shapes; raise once spatial tiling / larger channel
            # counts arrive (64-96 MiB on v5e/v6e, keep <= ~48 MiB on v7x).
            vmem_limit_bytes=32 * 1024 * 1024,
        ),
    )(p, w1, b1, w2, b2, mask1)
    return out


# ----------------------------- reference (plain JAX) ------------------------------

@jax.jit
def down_reference(x_nchw, params):
    x = jnp.transpose(x_nchw, (0, 2, 3, 1))
    y = lax.reduce_window(x, -jnp.inf, lax.max, (1, 2, 2, 1), (1, 2, 2, 1), "VALID")

    def block(y, w, b, g, be, m, v):
        w_hwio = jnp.transpose(w, (2, 3, 1, 0))
        z = lax.conv_general_dilated(y, w_hwio, (1, 1), "SAME",
                                     dimension_numbers=("NHWC", "HWIO", "NHWC")) + b
        z = (z - m) / jnp.sqrt(v + EPS) * g + be
        return jnp.maximum(z, 0.0)

    y = block(y, params["w1"], params["b1"], params["g1"], params["be1"], params["m1"], params["v1"])
    y = block(y, params["w2"], params["b2"], params["g2"], params["be2"], params["m2"], params["v2"])
    return jnp.transpose(y, (0, 3, 1, 2))


# --------------------------------- main --------------------------------------------

if __name__ == "__main__":
    key = jax.random.PRNGKey(0)
    in_channels, out_channels = 4, 8
    N, H, W = 2, 16, 16

    keys = jax.random.split(key, 16)
    params = {
        "w1": jax.random.normal(keys[0], (out_channels, in_channels, 3, 3), jnp.float32) * 0.1,
        "b1": jax.random.normal(keys[1], (out_channels,), jnp.float32) * 0.05,
        "g1": jax.random.uniform(keys[2], (out_channels,), jnp.float32, 0.8, 1.2),
        "be1": jax.random.normal(keys[3], (out_channels,), jnp.float32) * 0.1,
        "m1": jax.random.normal(keys[4], (out_channels,), jnp.float32) * 0.05,
        "v1": jax.random.uniform(keys[5], (out_channels,), jnp.float32, 0.5, 1.5),
        "w2": jax.random.normal(keys[6], (out_channels, out_channels, 3, 3), jnp.float32) * 0.1,
        "b2": jax.random.normal(keys[7], (out_channels,), jnp.float32) * 0.05,
        "g2": jax.random.uniform(keys[8], (out_channels,), jnp.float32, 0.8, 1.2),
        "be2": jax.random.normal(keys[9], (out_channels,), jnp.float32) * 0.1,
        "m2": jax.random.normal(keys[10], (out_channels,), jnp.float32) * 0.05,
        "v2": jax.random.uniform(keys[11], (out_channels,), jnp.float32, 0.5, 1.5),
    }

    x = jax.random.normal(keys[12], (N, in_channels, H, W), jnp.float32)

    out = jax.block_until_ready(down_forward(x, params))
    ref = jax.block_until_ready(down_reference(x, params))

    assert out.shape == (N, out_channels, H // 2, W // 2), out.shape
    # Tolerance reflects bf16 MXU operands (f32 accumulation) vs. the f32 reference.
    np.testing.assert_allclose(np.asarray(out), np.asarray(ref), rtol=5e-2, atol=8e-2)

    print("KERNEL_OK")
</pallas_src>

<mosaic_0001>
module attributes {stable_mosaic.version = 11 : i64} {
  func.func @kernel(%arg0: i32, %arg1: memref<1x4x144xf32, #tpu.memory_space<vmem>>, %arg2: memref<8x36xbf16, #tpu.memory_space<vmem>>, %arg3: memref<8x1xf32, #tpu.memory_space<vmem>>, %arg4: memref<8x72xbf16, #tpu.memory_space<vmem>>, %arg5: memref<8x1xf32, #tpu.memory_space<vmem>>, %arg6: memref<1x122xf32, #tpu.memory_space<vmem>>, %arg7: memref<1x8x8x8xf32, #tpu.memory_space<vmem>>) attributes {dimension_semantics = [#tpu.dimension_semantics<parallel>], iteration_bounds = array<i64: 2>, scalar_prefetch = 0 : i64, scratch_operands = 0 : i64, tpu.core_type = #tpu.core_type<tc>, window_params = [{transform_indices = @transform_0, window_bounds = array<i64: 1, 4, 144>}, {pipeline_mode = #tpu.pipeline_mode<synchronous>, transform_indices = @transform_1, window_bounds = array<i64: 8, 36>}, {pipeline_mode = #tpu.pipeline_mode<synchronous>, transform_indices = @transform_2, window_bounds = array<i64: 8, 1>}, {pipeline_mode = #tpu.pipeline_mode<synchronous>, transform_indices = @transform_3, window_bounds = array<i64: 8, 72>}, {pipeline_mode = #tpu.pipeline_mode<synchronous>, transform_indices = @transform_4, window_bounds = array<i64: 8, 1>}, {pipeline_mode = #tpu.pipeline_mode<synchronous>, transform_indices = @transform_5, window_bounds = array<i64: 1, 122>}, {transform_indices = @transform_6, window_bounds = array<i64: 1, 8, 8, 8>}]} {
    %c0 = arith.constant 0 : index
    %c0_0 = arith.constant 0 : index
    %c0_1 = arith.constant 0 : index
    %0 = vector.load %arg1[%c0, %c0_0, %c0_1] : memref<1x4x144xf32, #tpu.memory_space<vmem>>, vector<1x4x144xf32>
    %1 = vector.shape_cast %0 : vector<1x4x144xf32> to vector<4x144xf32>
    %2 = arith.truncf %1 : vector<4x144xf32> to vector<4x144xbf16>
    %c0_2 = arith.constant 0 : index
    %c0_3 = arith.constant 0 : index
    %3 = vector.load %arg2[%c0_2, %c0_3] : memref<8x36xbf16, #tpu.memory_space<vmem>>, vector<8x36xbf16>
    %c0_4 = arith.constant 0 : index
    %c0_5 = arith.constant 0 : index
    %4 = vector.load %arg3[%c0_4, %c0_5] : memref<8x1xf32, #tpu.memory_space<vmem>>, vector<8x1xf32>
    %5 = vector.extract_strided_slice %2 {offsets = [0, 0], sizes = [4, 122], strides = [1, 1]} : vector<4x144xbf16> to vector<4x122xbf16>
    %6 = vector.extract_strided_slice %2 {offsets = [0, 1], sizes = [4, 122], strides = [1, 1]} : vector<4x144xbf16> to vector<4x122xbf16>
    %7 = vector.extract_strided_slice %2 {offsets = [0, 2], sizes = [4, 122], strides = [1, 1]} : vector<4x144xbf16> to vector<4x122xbf16>
    %8 = vector.extract_strided_slice %2 {offsets = [0, 10], sizes = [4, 122], strides = [1, 1]} : vector<4x144xbf16> to vector<4x122xbf16>
    %9 = vector.extract_strided_slice %2 {offsets = [0, 11], sizes = [4, 122], strides = [1, 1]} : vector<4x144xbf16> to vector<4x122xbf16>
    %10 = vector.extract_strided_slice %2 {offsets = [0, 12], sizes = [4, 122], strides = [1, 1]} : vector<4x144xbf16> to vector<4x122xbf16>
    %11 = vector.extract_strided_slice %2 {offsets = [0, 20], sizes = [4, 122], strides = [1, 1]} : vector<4x144xbf16> to vector<4x122xbf16>
    %12 = vector.extract_strided_slice %2 {offsets = [0, 21], sizes = [4, 122], strides = [1, 1]} : vector<4x144xbf16> to vector<4x122xbf16>
    %13 = vector.extract_strided_slice %2 {offsets = [0, 22], sizes = [4, 122], strides = [1, 1]} : vector<4x144xbf16> to vector<4x122xbf16>
    %14 = tpu.concatenate %5, %6, %7, %8, %9, %10, %11, %12, %13 in 0 : vector<4x122xbf16>, vector<4x122xbf16>, vector<4x122xbf16>, vector<4x122xbf16>, vector<4x122xbf16>, vector<4x122xbf16>, vector<4x122xbf16>, vector<4x122xbf16>, vector<4x122xbf16> -> vector<36x122xbf16>
    %cst = arith.constant dense<0.000000e+00> : vector<8x122xf32>
    %15 = tpu.matmul %3, %14, %cst {dimension_numbers = #tpu.dot_dimension_numbers<[1], [0], [0], [1], [0, 0, 1, 1], [], []>} : vector<8x36xbf16>, vector<36x122xbf16>, vector<8x122xf32> -> vector<8x122xf32>
    %16 = vector.broadcast %4 : vector<8x1xf32> to vector<8x122xf32>
    %17 = arith.addf %15, %16 : vector<8x122xf32>
    %cst_6 = arith.constant 0.000000e+00 : f32
    %18 = vector.broadcast %cst_6 : f32 to vector<8x122xf32>
    %19 = arith.maximumf %17, %18 : vector<8x122xf32>
    %c0_7 = arith.constant 0 : index
    %c0_8 = arith.constant 0 : index
    %20 = vector.load %arg6[%c0_7, %c0_8] : memref<1x122xf32, #tpu.memory_space<vmem>>, vector<1x122xf32>
    %21 = vector.broadcast %20 : vector<1x122xf32> to vector<8x122xf32>
    %22 = arith.mulf %19, %21 : vector<8x122xf32>
    %23 = arith.truncf %22 : vector<8x122xf32> to vector<8x122xbf16>
    %c0_9 = arith.constant 0 : index
    %c0_10 = arith.constant 0 : index
    %24 = vector.load %arg4[%c0_9, %c0_10] : memref<8x72xbf16, #tpu.memory_space<vmem>>, vector<8x72xbf16>
    %c0_11 = arith.constant 0 : index
    %c0_12 = arith.constant 0 : index
    %25 = vector.load %arg5[%c0_11, %c0_12] : memref<8x1xf32, #tpu.memory_space<vmem>>, vector<8x1xf32>
    %26 = vector.extract_strided_slice %23 {offsets = [0, 0], sizes = [8, 100], strides = [1, 1]} : vector<8x122xbf16> to vector<8x100xbf16>
    %27 = vector.extract_strided_slice %23 {offsets = [0, 1], sizes = [8, 100], strides = [1, 1]} : vector<8x122xbf16> to vector<8x100xbf16>
    %28 = vector.extract_strided_slice %23 {offsets = [0, 2], sizes = [8, 100], strides = [1, 1]} : vector<8x122xbf16> to vector<8x100xbf16>
    %29 = vector.extract_strided_slice %23 {offsets = [0, 10], sizes = [8, 100], strides = [1, 1]} : vector<8x122xbf16> to vector<8x100xbf16>
    %30 = vector.extract_strided_slice %23 {offsets = [0, 11], sizes = [8, 100], strides = [1, 1]} : vector<8x122xbf16> to vector<8x100xbf16>
    %31 = vector.extract_strided_slice %23 {offsets = [0, 12], sizes = [8, 100], strides = [1, 1]} : vector<8x122xbf16> to vector<8x100xbf16>
    %32 = vector.extract_strided_slice %23 {offsets = [0, 20], sizes = [8, 100], strides = [1, 1]} : vector<8x122xbf16> to vector<8x100xbf16>
    %33 = vector.extract_strided_slice %23 {offsets = [0, 21], sizes = [8, 100], strides = [1, 1]} : vector<8x122xbf16> to vector<8x100xbf16>
    %34 = vector.extract_strided_slice %23 {offsets = [0, 22], sizes = [8, 100], strides = [1, 1]} : vector<8x122xbf16> to vector<8x100xbf16>
    %35 = tpu.concatenate %26, %27, %28, %29, %30, %31, %32, %33, %34 in 0 : vector<8x100xbf16>, vector<8x100xbf16>, vector<8x100xbf16>, vector<8x100xbf16>, vector<8x100xbf16>, vector<8x100xbf16>, vector<8x100xbf16>, vector<8x100xbf16>, vector<8x100xbf16> -> vector<72x100xbf16>
    %cst_13 = arith.constant dense<0.000000e+00> : vector<8x100xf32>
    %36 = tpu.matmul %24, %35, %cst_13 {dimension_numbers = #tpu.dot_dimension_numbers<[1], [0], [0], [1], [0, 0, 1, 1], [], []>} : vector<8x72xbf16>, vector<72x100xbf16>, vector<8x100xf32> -> vector<8x100xf32>
    %37 = vector.broadcast %25 : vector<8x1xf32> to vector<8x100xf32>
    %38 = arith.addf %36, %37 : vector<8x100xf32>
    %cst_14 = arith.constant 0.000000e+00 : f32
    %39 = vector.broadcast %cst_14 : f32 to vector<8x100xf32>
    %40 = arith.maximumf %38, %39 : vector<8x100xf32>
    %41 = vector.extract_strided_slice %40 {offsets = [0, 11], sizes = [8, 8], strides = [1, 1]} : vector<8x100xf32> to vector<8x8xf32>
    %c0_15 = arith.constant 0 : index
    %c0_16 = arith.constant 0 : index
    %c0_17 = arith.constant 0 : index
    %c0_18 = arith.constant 0 : index
    %42 = vector.load %arg7[%c0_15, %c0_16, %c0_17, %c0_18] : memref<1x8x8x8xf32, #tpu.memory_space<vmem>>, vector<1x8x1x8xf32>
    %43 = vector.shape_cast %42 : vector<1x8x1x8xf32> to vector<8x8xf32>
    %44 = vector.shape_cast %41 : vector<8x8xf32> to vector<1x8x1x8xf32>
    tpu.vector_store %arg7[%c0_15, %c0_16, %c0_17, %c0_18], %44 {strides = array<i32>} : memref<1x8x8x8xf32, #tpu.memory_space<vmem>>, vector<1x8x1x8xf32>,
    %45 = vector.extract_strided_slice %40 {offsets = [0, 21], sizes = [8, 8], strides = [1, 1]} : vector<8x100xf32> to vector<8x8xf32>
    %c0_19 = arith.constant 0 : index
    %c0_20 = arith.constant 0 : index
    %c1 = arith.constant 1 : index
    %c0_21 = arith.constant 0 : index
    %46 = vector.load %arg7[%c0_19, %c0_20, %c1, %c0_21] : memref<1x8x8x8xf32, #tpu.memory_space<vmem>>, vector<1x8x1x8xf32>
    %47 = vector.shape_cast %46 : vector<1x8x1x8xf32> to vector<8x8xf32>
    %48 = vector.shape_cast %45 : vector<8x8xf32> to vector<1x8x1x8xf32>
    tpu.vector_store %arg7[%c0_19, %c0_20, %c1, %c0_21], %48 {strides = array<i32>} : memref<1x8x8x8xf32, #tpu.memory_space<vmem>>, vector<1x8x1x8xf32>,
    %49 = vector.extract_strided_slice %40 {offsets = [0, 31], sizes = [8, 8], strides = [1, 1]} : vector<8x100xf32> to vector<8x8xf32>
    %c0_22 = arith.constant 0 : index
    %c0_23 = arith.constant 0 : index
    %c2 = arith.constant 2 : index
    %c0_24 = arith.constant 0 : index
    %50 = vector.load %arg7[%c0_22, %c0_23, %c2, %c0_24] : memref<1x8x8x8xf32, #tpu.memory_space<vmem>>, vector<1x8x1x8xf32>
    %51 = vector.shape_cast %50 : vector<1x8x1x8xf32> to vector<8x8xf32>
    %52 = vector.shape_cast %49 : vector<8x8xf32> to vector<1x8x1x8xf32>
    tpu.vector_store %arg7[%c0_22, %c0_23, %c2, %c0_24], %52 {strides = array<i32>} : memref<1x8x8x8xf32, #tpu.memory_space<vmem>>, vector<1x8x1x8xf32>,
    %53 = vector.extract_strided_slice %40 {offsets = [0, 41], sizes = [8, 8], strides = [1, 1]} : vector<8x100xf32> to vector<8x8xf32>
    %c0_25 = arith.constant 0 : index
    %c0_26 = arith.constant 0 : index
    %c3 = arith.constant 3 : index
    %c0_27 = arith.constant 0 : index
    %54 = vector.load %arg7[%c0_25, %c0_26, %c3, %c0_27] : memref<1x8x8x8xf32, #tpu.memory_space<vmem>>, vector<1x8x1x8xf32>
    %55 = vector.shape_cast %54 : vector<1x8x1x8xf32> to vector<8x8xf32>
    %56 = vector.shape_cast %53 : vector<8x8xf32> to vector<1x8x1x8xf32>
    tpu.vector_store %arg7[%c0_25, %c0_26, %c3, %c0_27], %56 {strides = array<i32>} : memref<1x8x8x8xf32, #tpu.memory_space<vmem>>, vector<1x8x1x8xf32>,
    %57 = vector.extract_strided_slice %40 {offsets = [0, 51], sizes = [8, 8], strides = [1, 1]} : vector<8x100xf32> to vector<8x8xf32>
    %c0_28 = arith.constant 0 : index
    %c0_29 = arith.constant 0 : index
    %c4 = arith.constant 4 : index
    %c0_30 = arith.constant 0 : index
    %58 = vector.load %arg7[%c0_28, %c0_29, %c4, %c0_30] : memref<1x8x8x8xf32, #tpu.memory_space<vmem>>, vector<1x8x1x8xf32>
    %59 = vector.shape_cast %58 : vector<1x8x1x8xf32> to vector<8x8xf32>
    %60 = vector.shape_cast %57 : vector<8x8xf32> to vector<1x8x1x8xf32>
    tpu.vector_store %arg7[%c0_28, %c0_29, %c4, %c0_30], %60 {strides = array<i32>} : memref<1x8x8x8xf32, #tpu.memory_space<vmem>>, vector<1x8x1x8xf32>,
    %61 = vector.extract_strided_slice %40 {offsets = [0, 61], sizes = [8, 8], strides = [1, 1]} : vector<8x100xf32> to vector<8x8xf32>
    %c0_31 = arith.constant 0 : index
    %c0_32 = arith.constant 0 : index
    %c5 = arith.constant 5 : index
    %c0_33 = arith.constant 0 : index
    %62 = vector.load %arg7[%c0_31, %c0_32, %c5, %c0_33] : memref<1x8x8x8xf32, #tpu.memory_space<vmem>>, vector<1x8x1x8xf32>
    %63 = vector.shape_cast %62 : vector<1x8x1x8xf32> to vector<8x8xf32>
    %64 = vector.shape_cast %61 : vector<8x8xf32> to vector<1x8x1x8xf32>
    tpu.vector_store %arg7[%c0_31, %c0_32, %c5, %c0_33], %64 {strides = array<i32>} : memref<1x8x8x8xf32, #tpu.memory_space<vmem>>, vector<1x8x1x8xf32>,
    %65 = vector.extract_strided_slice %40 {offsets = [0, 71], sizes = [8, 8], strides = [1, 1]} : vector<8x100xf32> to vector<8x8xf32>
    %c0_34 = arith.constant 0 : index
    %c0_35 = arith.constant 0 : index
    %c6 = arith.constant 6 : index
    %c0_36 = arith.constant 0 : index
    %66 = vector.load %arg7[%c0_34, %c0_35, %c6, %c0_36] : memref<1x8x8x8xf32, #tpu.memory_space<vmem>>, vector<1x8x1x8xf32>
    %67 = vector.shape_cast %66 : vector<1x8x1x8xf32> to vector<8x8xf32>
    %68 = vector.shape_cast %65 : vector<8x8xf32> to vector<1x8x1x8xf32>
    tpu.vector_store %arg7[%c0_34, %c0_35, %c6, %c0_36], %68 {strides = array<i32>} : memref<1x8x8x8xf32, #tpu.memory_space<vmem>>, vector<1x8x1x8xf32>,
    %69 = vector.extract_strided_slice %40 {offsets = [0, 81], sizes = [8, 8], strides = [1, 1]} : vector<8x100xf32> to vector<8x8xf32>
    %c0_37 = arith.constant 0 : index
    %c0_38 = arith.constant 0 : index
    %c7 = arith.constant 7 : index
    %c0_39 = arith.constant 0 : index
    %70 = vector.load %arg7[%c0_37, %c0_38, %c7, %c0_39] : memref<1x8x8x8xf32, #tpu.memory_space<vmem>>, vector<1x8x1x8xf32>
    %71 = vector.shape_cast %70 : vector<1x8x1x8xf32> to vector<8x8xf32>
    %72 = vector.shape_cast %69 : vector<8x8xf32> to vector<1x8x1x8xf32>
    tpu.vector_store %arg7[%c0_37, %c0_38, %c7, %c0_39], %72 {strides = array<i32>} : memref<1x8x8x8xf32, #tpu.memory_space<vmem>>, vector<1x8x1x8xf32>,
    return
  }
  func.func @transform_0(%arg0: i32) -> (i32, i32, i32) {
    %c0_i32 = arith.constant 0 : i32
    %c0_i32_0 = arith.constant 0 : i32
    %c0_i32_1 = arith.constant 0 : i32
    return %arg0, %c0_i32, %c0_i32_0 : i32, i32, i32
  }
  func.func @transform_1(%arg0: i32) -> (i32, i32) {
    %c0_i32 = arith.constant 0 : i32
    %c0_i32_0 = arith.constant 0 : i32
    %c0_i32_1 = arith.constant 0 : i32
    return %c0_i32, %c0_i32_0 : i32, i32
  }
  func.func @transform_2(%arg0: i32) -> (i32, i32) {
    %c0_i32 = arith.constant 0 : i32
    %c0_i32_0 = arith.constant 0 : i32
    %c0_i32_1 = arith.constant 0 : i32
    return %c0_i32, %c0_i32_0 : i32, i32
  }
  func.func @transform_3(%arg0: i32) -> (i32, i32) {
    %c0_i32 = arith.constant 0 : i32
    %c0_i32_0 = arith.constant 0 : i32
    %c0_i32_1 = arith.constant 0 : i32
    return %c0_i32, %c0_i32_0 : i32, i32
  }
  func.func @transform_4(%arg0: i32) -> (i32, i32) {
    %c0_i32 = arith.constant 0 : i32
    %c0_i32_0 = arith.constant 0 : i32
    %c0_i32_1 = arith.constant 0 : i32
    return %c0_i32, %c0_i32_0 : i32, i32
  }
  func.func @transform_5(%arg0: i32) -> (i32, i32) {
    %c0_i32 = arith.constant 0 : i32
    %c0_i32_0 = arith.constant 0 : i32
    %c0_i32_1 = arith.constant 0 : i32
    return %c0_i32, %c0_i32_0 : i32, i32
  }
  func.func @transform_6(%arg0: i32) -> (i32, i32, i32, i32) {
    %c0_i32 = arith.constant 0 : i32
    %c0_i32_0 = arith.constant 0 : i32
    %c0_i32_1 = arith.constant 0 : i32
    %c0_i32_2 = arith.constant 0 : i32
    return %arg0, %c0_i32, %c0_i32_0, %c0_i32_1 : i32, i32, i32, i32
  }
}

</mosaic_0001>

<bundles_post_ra>
// kernel: down_forward.1
= control target key start
LH: loop header
LB: loop body
LE: loop exit
PB: predicated region body
PF: predicated region fallthrough
CT: control target
= control target key end

     0   :  { %11 = vsyncpa [#allocation3], 0  ;;  %s1372_s0 = inlined_call_operand.vmem [shape: f32[2,4,144], index: 0, kind: input, shape index: {}]   ;;  %s1373_s1 = inlined_call_operand.vmem [shape: bf16[8,36], index: 1, kind: input, shape index: {}]   ;;  %s1374_s2 = inlined_call_operand.vmem [shape: f32[8,1], index: 2, kind: input, shape index: {}]   ;;  %s1375_s3 = inlined_call_operand.vmem [shape: bf16[8,72], index: 3, kind: input, shape index: {}]   ;;  %s1376_s4 = inlined_call_operand.vmem [shape: f32[8,1], index: 4, kind: input, shape index: {}]   ;;  %s1377_s5 = inlined_call_operand.vmem [shape: f32[1,122], index: 5, kind: input, shape index: {}]   ;;  %s1378_s6 = inlined_call_operand.hbm [shape: f32[2,8,8,8], index: 6, kind: output, shape index: {}]  }
   0x1   :  { %13 = vsyncpa [#allocation3 + $0x1], 0  ;;  %s966_s21 = smov 0   ;;  %s968_s22 = smov 0  }
   0x2   :  { %s970_s23 = smov 0   ;;  %s972_s24 = smov 0  }
   0x3 LB: > { %s987_s25 = sadd.s32 4294967295, %s912_s24   ;;  %s775_s26 = sadd.s32 4294967294, %s912_s24   ;;  %s912_s24 = sphi %s972_s24, %s1384_s24   ;;  %s908_s23 = sphi %s970_s23, %s1383_s23   ;;  %s904_s22 = sphi %s968_s22, %s1382_s22   ;;  %s900_s21 = sphi %s966_s21, %s1381_s21  }
   0x4   : > { %s991_s27 = sadd.s32 1, %s912_s24   ;;  %s157_s28 = sadd.s32 1, %s908_s23 }
   0x5   : > { %s154_s29 = ssub.s32 %s912_s24, %s991_s27  ;;  %p167_p0 = scmp.ne.s32.totalorder %s908_s23, %s904_s22 }
   0x6   : > { %p155_p1 = scmp.eq.s32.totalorder %s154_s29, 0  ;;  %p168_p2 = scmp.eq.s32.totalorder %s987_s25, 1 }
   0x7   : > { %p173_p3 = scmp.ne.s32.totalorder %s904_s22, %s900_s21  ;;  %p174_p4 = scmp.eq.s32.totalorder %s775_s26, 1 }
   0x8   : > { %s1002_s30 = scalar_select %p155_p1, %s908_s23, %s157_s28  }
   0x9   : > { %p1004_p5 = por %p168_p2, %p167_p0  ;;  %p1008_p6 = por %p174_p4, %p173_p3 }
   0xa   : > { %p778_p7 = scmp.ge.s32.totalorder %s912_s24, 1  ;;  %p215_p8 = scmp.lt.s32.totalorder %s912_s24, 3 }
   0xc   : > { %p216_p9 = pnand %p778_p7, %p215_p8 }
   0xd   : > { %p245_p10 = scmp.lt.s32.totalorder (!%p216_p9), %s987_s25, 1  ;;  %s914_s14 = smov (!%p216_p9), 117  }
   0xe   : > { %219 = sbr.rel (%p216_p9) target bundleno = 888 (0x378), region = 44  ;;  %s915_s15 = smov (!%p216_p9), 106  }
   0xf   : > { %s916_s16 = smov (!%p216_p9), 116   ;;  %s917_s17 = smov (!%p216_p9), 108  }
  0x10   : > { %s918_s18 = smov (!%p216_p9), 107   ;;  %s919_s19 = smov (!%p216_p9), 127  }
  0x11   : > { %s920_s20 = smov (!%p216_p9), 126   ;;  %s921_s26 = smov (!%p216_p9), 118  }
  0x12   : > { %s927_s29 = smov (!%p216_p9), 47   ;;  %s790_s11 = sshll.u32 (!%p216_p9), %s987_s25, 6 }
  0x13   : > { %s246_s9 = scalar_select %p245_p10, %s987_s25, 1  ;;  %vm308_vm0 = vcmask 867328   ;;  %v260_v15 = vld [vmem:[%s1374_s2] sm:$0xff]  ;;  %vm310_vm1 = vcmask 1041408   ;;  %v922_v16 = vmov 0   ;;  %vm283_vm2 = vcmask 957440  }
  0x14   : > { %847 = vset.pattern.permute.xlu2 %v922_v16  ;;  %848 = vset.pattern.permute.xlu0 %v922_v16  ;;  %vm290_vm3 = vcmask 949248   ;;  %vm296_vm4 = vcmask 883712   ;;  %vm302_vm5 = vcmask 875520   ;;  %vm314_vm6 = vcmask 1043456   ;;  %v259_v41 = vld [vmem:[%s1373_s1] sm:$0xf]  ;;  %s709_s28 = scalar_lea.hbm %s1378_s6, %s790_s11 }
  0x15   : > { %s789_s10 = sshll.u32 %s246_s9, 3  ;;  %vm317_vm7 = vcmask 1045504   ;;  %vm277_vm8 = vcmask 965632   ;;  %vm334_vm9 = vcmask 293888   ;;  %v849_v44 = vld [vmem:[%s1377_s5] ss:$0 sm:$0xff] }
  0x16   : > { %s249_s13 = scalar_lea.vmem %s1372_s0, %s789_s10  ;;  %v362_v52 = vld [vmem:[%s1376_s4] sm:$0xff]  ;;  %vm403_vm10 = vcmask 588800   ;;  %s928_s9 = smov 57   ;;  %vm464_vm11 = vcmask 57344  }
  0x17   : > { %v251_v0 = vld [vmem:[%s249_s13] sm:$0xff] }
  0x18   : > { %253 = vst [vmem:[#allocation1] ss:$2 sm:$0xff] %v251_v0 }
  0x1f   : > { %v254_v1 = vld.sshfl [vmem:[#allocation1] sm:$0xff pattern:$0x75316420]  ;;  %v255_v2 = vld.sshfl [vmem:[#allocation1 + $0x8] sm:$0xff pattern:$0x75316420] }
  0x20   : > { %v1019_v3 = vpack.c.bf16 %v255_v2, %v254_v1  ;;  %v361_v2 = vld [vmem:[%s1375_s3] sm:$0xf] }
  0x22   : > { %v262_v4 = vunpack.c.l.b16 %v1019_v3  ;;  %v269_v6 = vunpack.c.h.b16 %v1019_v3 }
  0x24   : > { %v263_v5 = vpack.c.b16 %v262_v4, %v262_v4  ;;  %v270_v8 = vpack.c.b16 %v269_v6, %v269_v6 }
  0x26   : > { %279 = vrot.lane.b32.xlu1 %v263_v5, %s914_s14  ;;  %304 = vrot.lane.b32.xlu0 %v263_v5, %s915_s15  ;;  %v264_v7 = vrot.slane %v263_v5, 6  ;;  %v285_v9 = vrot.slane %v270_v8, 6  ;;  %v271_v10 = vrot.slane %v263_v5, 2  ;;  %v272_v11 = vrot.slane %v270_v8, 2 }
  0x28   : > { %286 = vrot.lane.b32.xlu2 %v264_v7, %s916_s16 }
  0x2e   : > { %281 = vrot.lane.b32.xlu1 %v270_v8, %s914_s14  ;;  %306 = vrot.lane.b32.xlu0 %v270_v8, %s915_s15 }
  0x30   : > { %288 = vrot.lane.b32.xlu2 %v285_v9, %s916_s16 }
  0x36   : > { %294 = vrot.lane.b32.xlu1 %v270_v8, %s917_s17  ;;  %292 = vrot.lane.b32.xlu0 %v263_v5, %s917_s17 }
  0x38   : > { %298 = vrot.lane.b32.xlu2 %v271_v10, %s918_s18 }
  0x3e   : > { %300 = vrot.lane.b32.xlu0 %v272_v11, %s918_s18  ;;  %265 = vrot.lane.b32.xlu1 %v264_v7, %s919_s19 }
  0x40   : > { %267 = vrot.lane.b32.xlu2 %v263_v5, %s920_s20 }
  0x46   : > { %273 = vrot.lane.b32.xlu0 %v271_v10, %s921_s26  ;;  %275 = vrot.lane.b32.xlu1 %v272_v11, %s921_s26 }
  0x48   : > { %331 = vperm.xlu2 %847, %v260_v15  }
  0x82   : > { %v287_v12 = vpop.permute.xlu2 %286 }
  0x8a   : > { %v289_v20 = vpop.permute.xlu2 %288 }
  0x8b   : > { %v291_v26 = vsel %vm290_vm3, %v287_v12, %v289_v20 }
  0x92   : > { %v299_v24 = vpop.permute.xlu2 %298 }
  0x98   : > { %v280_v13 = vpop.permute.xlu1 %279  ;;  %v305_v14 = vpop.permute.xlu0 %304 }
  0x9a   : > { %v268_v35 = vpop.permute.xlu2 %267 }
  0xa0   : > { %v282_v17 = vpop.permute.xlu1 %281  ;;  %v307_v18 = vpop.permute.xlu0 %306 }
  0xa1   : > { %v309_v19 = vsel %vm308_vm0, %v305_v14, %v307_v18  ;;  %v284_v25 = vsel %vm283_vm2, %v280_v13, %v282_v17 }
  0xa2   : > { %v339_v21 = vsel %vm310_vm1, %v309_v19, 0  ;;  %v323_v28 = vsel %vm310_vm1, %v284_v25, %v291_v26  ;;  %v332_v42 = vpop.permute.xlu2 %331 }
  0xa3   : > { %346 = vmatpush.bf16.msra.mxu0 %v339_v21 }
  0xa8   : > { %v295_v22 = vpop.permute.xlu1 %294  ;;  %v293_v23 = vpop.permute.xlu0 %292 }
  0xa9   : > { %v297_v27 = vsel %vm296_vm4, %v293_v23, %v295_v22 }
  0xaa   : > { %v325_v32 = vsel %vm314_vm6, %v323_v28, %v297_v27 }
  0xb0   : > { %v301_v29 = vpop.permute.xlu0 %300  ;;  %v266_v30 = vpop.permute.xlu1 %265 }
  0xb1   : > { %v303_v31 = vsel %vm302_vm5, %v299_v24, %v301_v29  ;;  %v313_v34 = vsel %vm310_vm1, %v1019_v3, %v266_v30 }
  0xb2   : > { %v327_v33 = vsel %vm317_vm7, %v325_v32, %v303_v31  ;;  %v316_v38 = vsel %vm314_vm6, %v313_v34, %v268_v35 }
  0xb3   : > { %347 = vmatpush.bf16.msra.mxu0 %v327_v33 }
  0xb8   : > { %v274_v36 = vpop.permute.xlu0 %273  ;;  %v276_v37 = vpop.permute.xlu1 %275 }
  0xb9   : > { %v278_v39 = vsel %vm277_vm8, %v274_v36, %v276_v37 }
  0xba   : > { %v319_v40 = vsel %vm317_vm7, %v316_v38, %v278_v39 }
  0xbb   : > { %348 = vmatpush.bf16.msra.mxu0 %v319_v40 }
  0xbe   : > { %782 = vmatmul.msk.bf16.vlgmr.msra.gmra.mxu0 %vm334_vm9, %v259_v41 }
 0x13b   : > { %v350_v43 = vpop.f32.mrf.mxu0 }
 0x13c   : > { %v351_v45 = vadd.f32 %v350_v43, %v332_v42 }
 0x13e   : > { %v354_v46 = vmax.f32 %v351_v45, 0.0 }
 0x140   : > { %v359_v47 = vmul.f32 %v849_v44, %v354_v46 }
 0x142   : > { %v360_v48 = vpack.c.bf16 %v359_v47, %v359_v47 }
 0x143   : > { %v352_v49 = vpop.f32.mrf.mxu0 }
 0x144   : > { %v364_v50 = vunpack.c.l.b16 %v360_v48 }
 0x146   : > { %v365_v51 = vpack.c.b16 %v364_v50, %v364_v50 }
 0x148   : > { %378 = vrot.lane.b32.xlu2 %v365_v51, %s918_s18  ;;  %376 = vrot.lane.b32.xlu1 %v365_v51, %s917_s17  ;;  %s923_s17 = smov 97  }
 0x149   : > { %380 = vrot.lane.b32.xlu0 %v365_v51, %s915_s15 }
 0x150   : > { %368 = vrot.lane.b32.xlu2 %v365_v51, %s920_s20  ;;  %374 = vrot.lane.b32.xlu1 %v365_v51, %s916_s16  ;;  %s925_s20 = smov 77   ;;  %s712_s16 = sshll.u32 %s709_s28, 4  ;;  %s713_s16 = int_to_ptr.hbm [resolvable:$true] %s712_s16 }
 0x151   : > { %372 = vrot.lane.b32.xlu0 %v365_v51, %s914_s14 }
 0x158   : > { %400 = vperm.xlu2 %847, %v362_v52   ;;  %366 = vrot.lane.b32.xlu1 %v365_v51, %s919_s19  ;;  %s924_s19 = smov 67  }
 0x159   : > { %370 = vrot.lane.b32.xlu0 %v365_v51, %s921_s26  ;;  %s926_s26 = smov 87  }
 0x1a2   : > { %v379_v56 = vpop.permute.xlu2 %378 }
 0x1aa   : > { %v369_v61 = vpop.permute.xlu2 %368 }
 0x1b2   : > { %v401_v3 = vpop.permute.xlu2 %400 }
 0x1ba   : > { %v377_v53 = vpop.permute.xlu1 %376 }
 0x1bb   : > { %v381_v54 = vpop.permute.xlu0 %380  ;;  %v396_v57 = vsel %vm314_vm6, %v377_v53, %v379_v56 }
 0x1bc   : > { %v408_v55 = vsel %vm314_vm6, %v381_v54, 0 }
 0x1bd   : > { %413 = vmatpush.bf16.msra.mxu1 %v408_v55 }
 0x1c1   : > { %414 = vmatpush.bf16.msra.mxu1 %v396_v57 }
 0x1c2   : > { %v375_v58 = vpop.permute.xlu1 %374 }
 0x1c3   : > { %v373_v59 = vpop.permute.xlu0 %372 }
 0x1c4   : > { %v392_v60 = vsel %vm314_vm6, %v373_v59, %v375_v58 }
 0x1c5   : > { %415 = vmatpush.bf16.msra.mxu1 %v392_v60 }
 0x1ca   : > { %v367_v0 = vpop.permute.xlu1 %366 }
 0x1cb   : > { %v371_v62 = vpop.permute.xlu0 %370  ;;  %v384_v1 = vsel %vm314_vm6, %v360_v48, %v367_v0 }
 0x1cc   : > { %v388_v63 = vsel %vm314_vm6, %v369_v61, %v371_v62 }
 0x1cd   : > { %416 = vmatpush.bf16.msra.mxu1 %v388_v63 }
 0x1d1   : > { %417 = vmatpush.bf16.msra.mxu1 %v384_v1 }
 0x1d4   : > { %783 = vmatmul.msk.bf16.vlgmr.msra.gmra.mxu1 %vm403_vm10, %v361_v2 }
 0x251   : > { %v419_v4 = vpop.f32.mrf.mxu1 }
 0x252   : > { %v420_v5 = vadd.f32 %v419_v4, %v401_v3 }
 0x254   : > { %v423_v6 = vmax.f32 %v420_v5, 0.0 }
 0x256   : > { %v432_v7 = vperm.slane %v423_v6, 0  ;;  %v425_v9 = vrot.slane %v423_v6, 1  ;;  %v426_v11 = vrot.slane %v423_v6, 2  ;;  %v428_v12 = vrot.slane %v423_v6, 4 }
 0x257   : > { %v427_v13 = vrot.slane %v423_v6, 3  ;;  %v429_v17 = vrot.slane %v423_v6, 5  ;;  %v431_v18 = vrot.slane %v423_v6, 7  ;;  %v430_v19 = vrot.slane %v423_v6, 6 }
 0x258   : > { %505 = vrot.lane.b32.xlu1 %v432_v7, %s923_s17  ;;  %473 = vrot.lane.b32.xlu2 %v432_v7, %s918_s18  ;;  %v1077_v10 = vperm.slane %v425_v9, 0  ;;  %v1083_v14 = vperm.slane %v426_v11, 0  ;;  %v1085_v15 = vperm.slane %v428_v12, 0 }
 0x259   : > { %440 = vrot.lane.b32.xlu0 %v432_v7, %s914_s14  ;;  %v421_v8 = vpop.f32.mrf.mxu1  ;;  %v1087_v16 = vperm.slane %v427_v13, 0  ;;  %v1095_v20 = vperm.slane %v429_v17, 0  ;;  %v1097_v21 = vperm.slane %v431_v18, 0  ;;  %v1099_v22 = vperm.slane %v430_v19, 0 }
 0x260   : > { %601 = vrot.lane.b32.xlu1 %v432_v7, %s924_s19  ;;  %569 = vrot.lane.b32.xlu2 %v432_v7, %s925_s20 }
 0x261   : > { %537 = vrot.lane.b32.xlu0 %v432_v7, %s926_s26 }
 0x268   : > { %665 = vrot.lane.b32.xlu2 %v432_v7, %s927_s29  ;;  %442 = vrot.lane.b32.xlu1 %v1077_v10, %s914_s14 }
 0x269   : > { %633 = vrot.lane.b32.xlu0 %v432_v7, %s928_s9 }
 0x270   : > { %444 = vrot.lane.b32.xlu2 %v1083_v14, %s914_s14  ;;  %448 = vrot.lane.b32.xlu1 %v1085_v15, %s914_s14 }
 0x271   : > { %446 = vrot.lane.b32.xlu0 %v1087_v16, %s914_s14 }
 0x278   : > { %450 = vrot.lane.b32.xlu2 %v1095_v20, %s914_s14  ;;  %454 = vrot.lane.b32.xlu1 %v1097_v21, %s914_s14 }
 0x279   : > { %452 = vrot.lane.b32.xlu0 %v1099_v22, %s914_s14  ;;  %s242_s14 = sand.u32 1, %s904_s22  }
 0x27a   : > { %s698_s25 = scalar_lea.sflag [#allocation3], %s242_s14 }
 0x280   : > { %479 = vrot.lane.b32.xlu2 %v1087_v16, %s918_s18  ;;  %477 = vrot.lane.b32.xlu1 %v1083_v14, %s918_s18 }
 0x281   : > { %475 = vrot.lane.b32.xlu0 %v1077_v10, %s918_s18 }
 0x288   : > { %485 = vrot.lane.b32.xlu2 %v1099_v22, %s918_s18  ;;  %483 = vrot.lane.b32.xlu1 %v1095_v20, %s918_s18 }
 0x289   : > { %481 = vrot.lane.b32.xlu0 %v1085_v15, %s918_s18 }
 0x290   : > { %507 = vrot.lane.b32.xlu2 %v1077_v10, %s923_s17  ;;  %511 = vrot.lane.b32.xlu1 %v1087_v16, %s923_s17 }
 0x291   : > { %487 = vrot.lane.b32.xlu0 %v1097_v21, %s918_s18  ;;  %s779_s18 = sshll.u32 %s242_s14, 6 }
 0x292   : > { %s1152_s10 = scalar_lea.vmem [#allocation2], %s779_s18 }
 0x293   : > { %s710_s15 = sshll.u32 %s1152_s10, 4  ;;  %s711_s15 = int_to_ptr.vmem [resolvable:$true] %s710_s15 }
 0x298   : > { %513 = vrot.lane.b32.xlu2 %v1085_v15, %s923_s17  ;;  %517 = vrot.lane.b32.xlu1 %v1099_v22, %s923_s17 }
 0x299   : > { %509 = vrot.lane.b32.xlu0 %v1083_v14, %s923_s17 }
 0x2a0   : > { %519 = vrot.lane.b32.xlu2 %v1097_v21, %s923_s17  ;;  %539 = vrot.lane.b32.xlu1 %v1077_v10, %s926_s26 }
 0x2a1   : > { %515 = vrot.lane.b32.xlu0 %v1095_v20, %s923_s17  ;;  %s864_s17 = sshra.s32 %s713_s16, 4  ;;  %s865_s17 = int_to_ptr.hbm [resolvable:$true] %s864_s17 }
 0x2a2   : > { %p871_p0 = scmp.lt.s32.totalorder %s865_s17, %s1378_s6 }
 0x2a8   : > { %541 = vrot.lane.b32.xlu2 %v1083_v14, %s926_s26  ;;  %545 = vrot.lane.b32.xlu1 %v1085_v15, %s926_s26 }
 0x2a9   : > { %543 = vrot.lane.b32.xlu0 %v1087_v16, %s926_s26 }
 0x2b0   : > { %547 = vrot.lane.b32.xlu2 %v1095_v20, %s926_s26  ;;  %551 = vrot.lane.b32.xlu1 %v1097_v21, %s926_s26 }
 0x2b1   : > { %549 = vrot.lane.b32.xlu0 %v1099_v22, %s926_s26 }
 0x2b2   : > { %v474_v23 = vpop.permute.xlu2 %473 }
 0x2b3   : > { %497 = vst.msk [vmem:[%s1152_s10 + $0x1] sm:$0x1] %vm464_vm11, %v474_v23 }
 0x2b8   : > { %575 = vrot.lane.b32.xlu2 %v1087_v16, %s925_s20  ;;  %573 = vrot.lane.b32.xlu1 %v1083_v14, %s925_s20 }
 0x2b9   : > { %571 = vrot.lane.b32.xlu0 %v1077_v10, %s925_s20 }
 0x2ba   : > { %v570_v24 = vpop.permute.xlu2 %569 }
 0x2bb   : > { %593 = vst.msk [vmem:[%s1152_s10 + $0x4] sm:$0x1] %vm464_vm11, %v570_v24 }
 0x2c0   : > { %581 = vrot.lane.b32.xlu2 %v1099_v22, %s925_s20  ;;  %579 = vrot.lane.b32.xlu1 %v1095_v20, %s925_s20 }
 0x2c1   : > { %577 = vrot.lane.b32.xlu0 %v1085_v15, %s925_s20 }
 0x2c2   : > { %v666_v25 = vpop.permute.xlu2 %665 }
 0x2c3   : > { %689 = vst.msk [vmem:[%s1152_s10 + $0x7] sm:$0x1] %vm464_vm11, %v666_v25 }
 0x2c8   : > { %603 = vrot.lane.b32.xlu2 %v1077_v10, %s924_s19  ;;  %607 = vrot.lane.b32.xlu1 %v1087_v16, %s924_s19 }
 0x2c9   : > { %583 = vrot.lane.b32.xlu0 %v1097_v21, %s925_s20 }
 0x2ca   : > { %v506_v26 = vpop.permute.xlu1 %505  ;;  %v445_v27 = vpop.permute.xlu2 %444 }
 0x2cb   : > { %529 = vst.msk [vmem:[%s1152_s10 + $0x2] sm:$0x1] %vm464_vm11, %v506_v26  ;;  %v441_v28 = vpop.permute.xlu0 %440 }
 0x2cc   : > { %465 = vst.msk [vmem:[%s1152_s10] sm:$0x1] %vm464_vm11, %v441_v28 }
 0x2cd   : > { %467 = vst.msk [vmem:[%s1152_s10 + $0x10] sm:$0x1] %vm464_vm11, %v445_v27 }
 0x2d0   : > { %609 = vrot.lane.b32.xlu2 %v1085_v15, %s924_s19  ;;  %613 = vrot.lane.b32.xlu1 %v1099_v22, %s924_s19 }
 0x2d1   : > { %605 = vrot.lane.b32.xlu0 %v1083_v14, %s924_s19 }
 0x2d2   : > { %v602_v29 = vpop.permute.xlu1 %601  ;;  %v451_v30 = vpop.permute.xlu2 %450 }
 0x2d3   : > { %625 = vst.msk [vmem:[%s1152_s10 + $0x5] sm:$0x1] %vm464_vm11, %v602_v29  ;;  %v538_v31 = vpop.permute.xlu0 %537 }
 0x2d4   : > { %561 = vst.msk [vmem:[%s1152_s10 + $0x3] sm:$0x1] %vm464_vm11, %v538_v31 }
 0x2d5   : > { %470 = vst.msk [vmem:[%s1152_s10 + $0x28] sm:$0x1] %vm464_vm11, %v451_v30 }
 0x2d8   : > { %615 = vrot.lane.b32.xlu2 %v1097_v21, %s924_s19  ;;  %635 = vrot.lane.b32.xlu1 %v1077_v10, %s928_s9 }
 0x2d9   : > { %611 = vrot.lane.b32.xlu0 %v1095_v20, %s924_s19  ;;  %s866_s19 = scalar_lea.hbm %s865_s17, 64 }
 0x2da   : > { %v480_v32 = vpop.permute.xlu2 %479  ;;  %v443_v33 = vpop.permute.xlu1 %442  ;;  %p867_p11 = scmp.ne.s32.totalorder %s865_s17, %s866_s19 }
 0x2db   : > { %v634_v34 = vpop.permute.xlu0 %633  ;;  %500 = vst.msk [vmem:[%s1152_s10 + $0x19] sm:$0x1] %vm464_vm11, %v480_v32 }
 0x2dc   : > { %657 = vst.msk [vmem:[%s1152_s10 + $0x6] sm:$0x1] %vm464_vm11, %v634_v34  ;;  %p868_p12 = pnand %p867_p11, %p1004_p5 }
 0x2dd   : > { %466 = vst.msk [vmem:[%s1152_s10 + $0x8] sm:$0x1] %vm464_vm11, %v443_v33 }
 0x2de   : > { %p869_p13 = pneg %p868_p12 }
 0x2e0   : > { %637 = vrot.lane.b32.xlu2 %v1083_v14, %s928_s9  ;;  %641 = vrot.lane.b32.xlu1 %v1085_v15, %s928_s9 }
 0x2e1   : > { %639 = vrot.lane.b32.xlu0 %v1087_v16, %s928_s9 }
 0x2e2   : > { %v486_v35 = vpop.permute.xlu2 %485  ;;  %v449_v36 = vpop.permute.xlu1 %448 }
 0x2e3   : > { %v447_v37 = vpop.permute.xlu0 %446  ;;  %503 = vst.msk [vmem:[%s1152_s10 + $0x31] sm:$0x1] %vm464_vm11, %v486_v35 }
 0x2e4   : > { %468 = vst.msk [vmem:[%s1152_s10 + $0x18] sm:$0x1] %vm464_vm11, %v447_v37 }
 0x2e5   : > { %469 = vst.msk [vmem:[%s1152_s10 + $0x20] sm:$0x1] %vm464_vm11, %v449_v36 }
 0x2e8   : > { %643 = vrot.lane.b32.xlu2 %v1095_v20, %s928_s9  ;;  %647 = vrot.lane.b32.xlu1 %v1097_v21, %s928_s9 }
 0x2e9   : > { %645 = vrot.lane.b32.xlu0 %v1099_v22, %s928_s9 }
 0x2ea   : > { %v508_v38 = vpop.permute.xlu2 %507  ;;  %v455_v39 = vpop.permute.xlu1 %454 }
 0x2eb   : > { %v453_v40 = vpop.permute.xlu0 %452  ;;  %530 = vst.msk [vmem:[%s1152_s10 + $0xa] sm:$0x1] %vm464_vm11, %v508_v38 }
 0x2ec   : > { %471 = vst.msk [vmem:[%s1152_s10 + $0x30] sm:$0x1] %vm464_vm11, %v453_v40 }
 0x2ed   : > { %472 = vst.msk [vmem:[%s1152_s10 + $0x38] sm:$0x1] %vm464_vm11, %v455_v39 }
 0x2f0   : > { %671 = vrot.lane.b32.xlu2 %v1087_v16, %s927_s29  ;;  %669 = vrot.lane.b32.xlu1 %v1083_v14, %s927_s29 }
 0x2f1   : > { %667 = vrot.lane.b32.xlu0 %v1077_v10, %s927_s29 }
 0x2f2   : > { %v514_v41 = vpop.permute.xlu2 %513  ;;  %v478_v42 = vpop.permute.xlu1 %477 }
 0x2f3   : > { %533 = vst.msk [vmem:[%s1152_s10 + $0x22] sm:$0x1] %vm464_vm11, %v514_v41  ;;  %v476_v43 = vpop.permute.xlu0 %475 }
 0x2f4   : > { %498 = vst.msk [vmem:[%s1152_s10 + $0x9] sm:$0x1] %vm464_vm11, %v476_v43 }
 0x2f5   : > { %499 = vst.msk [vmem:[%s1152_s10 + $0x11] sm:$0x1] %vm464_vm11, %v478_v42 }
 0x2f8   : > { %677 = vrot.lane.b32.xlu2 %v1099_v22, %s927_s29  ;;  %675 = vrot.lane.b32.xlu1 %v1095_v20, %s927_s29 }
 0x2f9   : > { %673 = vrot.lane.b32.xlu0 %v1085_v15, %s927_s29 }
 0x2fa   : > { %v520_v44 = vpop.permute.xlu2 %519  ;;  %v484_v45 = vpop.permute.xlu1 %483 }
 0x2fb   : > { %536 = vst.msk [vmem:[%s1152_s10 + $0x3a] sm:$0x1] %vm464_vm11, %v520_v44  ;;  %v482_v46 = vpop.permute.xlu0 %481 }
 0x2fc   : > { %501 = vst.msk [vmem:[%s1152_s10 + $0x21] sm:$0x1] %vm464_vm11, %v482_v46 }
 0x2fd   : > { %502 = vst.msk [vmem:[%s1152_s10 + $0x29] sm:$0x1] %vm464_vm11, %v484_v45 }
 0x301   : > { %679 = vrot.lane.b32.xlu0 %v1097_v21, %s927_s29  ;;  %s870_s29 = scalar_lea.hbm %s1378_s6, 128 }
 0x302   : > { %v542_v47 = vpop.permute.xlu2 %541  ;;  %v512_v48 = vpop.permute.xlu1 %511  ;;  %p872_p1 = scmp.lt.s32.totalorder %s870_s29, %s866_s19 }
 0x303   : > { %563 = vst.msk [vmem:[%s1152_s10 + $0x13] sm:$0x1] %vm464_vm11, %v542_v47  ;;  %v488_v49 = vpop.permute.xlu0 %487 }
 0x304   : > { %504 = vst.msk [vmem:[%s1152_s10 + $0x39] sm:$0x1] %vm464_vm11, %v488_v49  ;;  %p873_p2 = por %p872_p1, %p871_p0 }
 0x305   : > { %532 = vst.msk [vmem:[%s1152_s10 + $0x1a] sm:$0x1] %vm464_vm11, %v512_v48 }
 0x306   : > { %p874_p3 = pnand %p873_p2, %p869_p13 }
 0x30a   : > { %v548_v50 = vpop.permute.xlu2 %547  ;;  %v518_v51 = vpop.permute.xlu1 %517 }
 0x30b   : > { %566 = vst.msk [vmem:[%s1152_s10 + $0x2b] sm:$0x1] %vm464_vm11, %v548_v50  ;;  %v510_v52 = vpop.permute.xlu0 %509 }
 0x30c   : > { %531 = vst.msk [vmem:[%s1152_s10 + $0x12] sm:$0x1] %vm464_vm11, %v510_v52 }
 0x30d   : > { %535 = vst.msk [vmem:[%s1152_s10 + $0x32] sm:$0x1] %vm464_vm11, %v518_v51 }
 0x312   : > { %v576_v53 = vpop.permute.xlu2 %575  ;;  %v540_v54 = vpop.permute.xlu1 %539 }
 0x313   : > { %596 = vst.msk [vmem:[%s1152_s10 + $0x1c] sm:$0x1] %vm464_vm11, %v576_v53  ;;  %v516_v55 = vpop.permute.xlu0 %515 }
 0x314   : > { %534 = vst.msk [vmem:[%s1152_s10 + $0x2a] sm:$0x1] %vm464_vm11, %v516_v55 }
 0x315   : > { %562 = vst.msk [vmem:[%s1152_s10 + $0xb] sm:$0x1] %vm464_vm11, %v540_v54 }
 0x31a   : > { %v582_v56 = vpop.permute.xlu2 %581  ;;  %v546_v57 = vpop.permute.xlu1 %545 }
 0x31b   : > { %599 = vst.msk [vmem:[%s1152_s10 + $0x34] sm:$0x1] %vm464_vm11, %v582_v56  ;;  %v544_v58 = vpop.permute.xlu0 %543 }
 0x31c   : > { %564 = vst.msk [vmem:[%s1152_s10 + $0x1b] sm:$0x1] %vm464_vm11, %v544_v58 }
 0x31d   : > { %565 = vst.msk [vmem:[%s1152_s10 + $0x23] sm:$0x1] %vm464_vm11, %v546_v57 }
 0x322   : > { %v604_v59 = vpop.permute.xlu2 %603  ;;  %v552_v60 = vpop.permute.xlu1 %551 }
 0x323   : > { %626 = vst.msk [vmem:[%s1152_s10 + $0xd] sm:$0x1] %vm464_vm11, %v604_v59  ;;  %v550_v61 = vpop.permute.xlu0 %549 }
 0x324   : > { %567 = vst.msk [vmem:[%s1152_s10 + $0x33] sm:$0x1] %vm464_vm11, %v550_v61 }
 0x325   : > { %568 = vst.msk [vmem:[%s1152_s10 + $0x3b] sm:$0x1] %vm464_vm11, %v552_v60 }
 0x32a   : > { %v610_v62 = vpop.permute.xlu2 %609  ;;  %v574_v63 = vpop.permute.xlu1 %573 }
 0x32b   : > { %629 = vst.msk [vmem:[%s1152_s10 + $0x25] sm:$0x1] %vm464_vm11, %v610_v62  ;;  %v572_v0 = vpop.permute.xlu0 %571 }
 0x32c   : > { %594 = vst.msk [vmem:[%s1152_s10 + $0xc] sm:$0x1] %vm464_vm11, %v572_v0 }
 0x32d   : > { %595 = vst.msk [vmem:[%s1152_s10 + $0x14] sm:$0x1] %vm464_vm11, %v574_v63 }
 0x332   : > { %v616_v1 = vpop.permute.xlu2 %615  ;;  %v580_v2 = vpop.permute.xlu1 %579 }
 0x333   : > { %632 = vst.msk [vmem:[%s1152_s10 + $0x3d] sm:$0x1] %vm464_vm11, %v616_v1  ;;  %v578_v3 = vpop.permute.xlu0 %577 }
 0x334   : > { %597 = vst.msk [vmem:[%s1152_s10 + $0x24] sm:$0x1] %vm464_vm11, %v578_v3 }
 0x335   : > { %598 = vst.msk [vmem:[%s1152_s10 + $0x2c] sm:$0x1] %vm464_vm11, %v580_v2 }
 0x33a   : > { %v638_v4 = vpop.permute.xlu2 %637  ;;  %v608_v5 = vpop.permute.xlu1 %607 }
 0x33b   : > { %659 = vst.msk [vmem:[%s1152_s10 + $0x16] sm:$0x1] %vm464_vm11, %v638_v4  ;;  %v584_v6 = vpop.permute.xlu0 %583 }
 0x33c   : > { %600 = vst.msk [vmem:[%s1152_s10 + $0x3c] sm:$0x1] %vm464_vm11, %v584_v6 }
 0x33d   : > { %628 = vst.msk [vmem:[%s1152_s10 + $0x1d] sm:$0x1] %vm464_vm11, %v608_v5 }
 0x342   : > { %v644_v7 = vpop.permute.xlu2 %643  ;;  %v614_v8 = vpop.permute.xlu1 %613 }
 0x343   : > { %662 = vst.msk [vmem:[%s1152_s10 + $0x2e] sm:$0x1] %vm464_vm11, %v644_v7  ;;  %v606_v9 = vpop.permute.xlu0 %605 }
 0x344   : > { %627 = vst.msk [vmem:[%s1152_s10 + $0x15] sm:$0x1] %vm464_vm11, %v606_v9 }
 0x345   : > { %631 = vst.msk [vmem:[%s1152_s10 + $0x35] sm:$0x1] %vm464_vm11, %v614_v8 }
 0x34a   : > { %v672_v10 = vpop.permute.xlu2 %671  ;;  %v636_v11 = vpop.permute.xlu1 %635 }
 0x34b   : > { %692 = vst.msk [vmem:[%s1152_s10 + $0x1f] sm:$0x1] %vm464_vm11, %v672_v10  ;;  %v612_v12 = vpop.permute.xlu0 %611 }
 0x34c   : > { %630 = vst.msk [vmem:[%s1152_s10 + $0x2d] sm:$0x1] %vm464_vm11, %v612_v12 }
 0x34d   : > { %658 = vst.msk [vmem:[%s1152_s10 + $0xe] sm:$0x1] %vm464_vm11, %v636_v11 }
 0x352   : > { %v678_v13 = vpop.permute.xlu2 %677  ;;  %v642_v14 = vpop.permute.xlu1 %641 }
 0x353   : > { %695 = vst.msk [vmem:[%s1152_s10 + $0x37] sm:$0x1] %vm464_vm11, %v678_v13  ;;  %v640_v15 = vpop.permute.xlu0 %639 }
 0x354   : > { %660 = vst.msk [vmem:[%s1152_s10 + $0x1e] sm:$0x1] %vm464_vm11, %v640_v15 }
 0x355   : > { %661 = vst.msk [vmem:[%s1152_s10 + $0x26] sm:$0x1] %vm464_vm11, %v642_v14 }
 0x35a   : > { %v648_v16 = vpop.permute.xlu1 %647 }
 0x35b   : > { %v646_v17 = vpop.permute.xlu0 %645  ;;  %664 = vst.msk [vmem:[%s1152_s10 + $0x3e] sm:$0x1] %vm464_vm11, %v648_v16 }
 0x35c   : > { %663 = vst.msk [vmem:[%s1152_s10 + $0x36] sm:$0x1] %vm464_vm11, %v646_v17 }
 0x362   : > { %v670_v18 = vpop.permute.xlu1 %669 }
 0x363   : > { %v668_v19 = vpop.permute.xlu0 %667  ;;  %691 = vst.msk [vmem:[%s1152_s10 + $0x17] sm:$0x1] %vm464_vm11, %v670_v18 }
 0x364   : > { %690 = vst.msk [vmem:[%s1152_s10 + $0xf] sm:$0x1] %vm464_vm11, %v668_v19 }
 0x36a   : > { %v676_v20 = vpop.permute.xlu1 %675 }
 0x36b   : > { %v674_v21 = vpop.permute.xlu0 %673  ;;  %694 = vst.msk [vmem:[%s1152_s10 + $0x2f] sm:$0x1] %vm464_vm11, %v676_v20 }
 0x36c   : > { %693 = vst.msk [vmem:[%s1152_s10 + $0x27] sm:$0x1] %vm464_vm11, %v674_v21 }
 0x373   : > { %v680_v22 = vpop.permute.xlu0 %679 }
 0x374   : > { %696 = vst.msk [vmem:[%s1152_s10 + $0x3f] sm:$0x1] %vm464_vm11, %v680_v22 }
 0x375   : > { %877 = shalt.err (!%p874_p3)
}
 0x376   : > { %s929_s14 = smov 128   ;;  %s930_s10 = smov 8  }
 0x377   : > { %791 = dma.vmem_to_hbm [thread:$0]  (%p1004_p5), %s711_s15, 1024, %s713_s16, %s698_s25, %s929_s14, %s929_s14, %s930_s10  }
 0x378 PF: > { %p797_p4 = scmp.ge.s32.totalorder %s912_s24, 2  ;;  %s727_s11 = sand.u32 1, %s900_s21  }
 0x379   : > { %s728_s12 = scalar_lea.sflag [#allocation3], %s727_s11 }
 0x37a   : > { %p794_p7 = pnand %p797_p4, %p1008_p6 }
 0x37c   : > { %p795_p8 = pneg %p794_p7 }
 0x37e   : > { %895 = dma.done.wait (%p795_p8), %s728_s12, 1024  }
 0x37f   : > { %897 = vsyncadd (%p795_p8), %s728_s12, 4294966272  ;;  %p16_p9 = scmp.ge.s32.totalorder %s991_s27, 4   ;;  %s1381_s21 = smov %s904_s22 }
 0x380   : > { %s1382_s22 = smov %s908_s23  ;;  %s1383_s23 = smov %s1002_s30 }
 0x381   : > { %s1384_s24 = smov %s991_s27  ;;  %18 = sbr.rel (!%p16_p9) target bundleno = 3 (0x3), region = 79 }
 0x386   :  { %734 = vsyncpa [#allocation3], 1 }
 0x387   :  { %736 = vsyncpa [#allocation3 + $0x1], 1 }

</bundles_post_ra>
